<compile_context>
chip_gen: v7x
topology: tpu7x:2x2x1
jax: 0.10.0
libtpu: 0.0.40
codegen_flags: <defaults>
</compile_context>

<pallas_src>
import functools

import jax
import jax.numpy as jnp
from jax import lax
from jax.experimental import pallas as pl
from jax.experimental.pallas import tpu as pltpu

_EPS = 1e-8  # matches torch.nn.CosineSimilarity default eps


def _round_up(v, m):
    return ((v + m - 1) // m) * m


def _similarity_kernel(x_ref, y_ref, inv_nx_ref, inv_ny_ref, o_ref, *, mxu_bf16):
    # X tile: [tm, H], Y tile: [tn, H], inv_nx: [tm, 1], inv_ny: [1, tn]
    x = x_ref[...]
    y = y_ref[...]
    if mxu_bf16 and x.dtype == jnp.float32:
        x = x.astype(jnp.bfloat16)
        y = y.astype(jnp.bfloat16)

    # Pairwise dot products on the MXU, NT layout (no transpose of y),
    # accumulated in f32.
    s = lax.dot_general(
        x, y,
        dimension_numbers=(((1,), (1,)), ((), ())),
        preferred_element_type=jnp.float32,
    )  # [tm, tn]

    # Scale by the precomputed inverse norms (1/temp already folded into
    # inv_nx).  Pure VPU broadcasts; no cross-lane relayout.
    o_ref[...] = (s * inv_nx_ref[...] * inv_ny_ref[...]).astype(o_ref.dtype)


def _vmem_limit_bytes():
    phys = 64 << 20  # conservative fallback (v7x per-TC VMEM)
    try:
        info = pltpu.get_tpu_info()
        phys = int(getattr(info, "vmem_capacity_bytes", phys))
    except Exception:
        pass
    # Leave headroom below physical VMEM:
    #   v5e/v6e (128 MiB) -> 96 MiB, v7x (64 MiB) -> 48 MiB.
    return min((phys * 3) // 4, 100 << 20)


def _pipeline_bytes(tm, tn, H, in_dsize, out_dsize):
    # Double-buffered input tiles + double-buffered output tile + norm tiles.
    return (2 * (tm + tn) * H * in_dsize
            + 2 * tm * tn * out_dsize
            + 2 * (tm + tn) * 4)


def _select_tiles(B, B2, H, in_dsize, out_dsize, budget):
    tm_cap = _round_up(max(B, 1), 8)
    tn_cap = _round_up(max(B2, 1), 128)
    for tn in (min(256, tn_cap), min(128, tn_cap)):
        for cand in (1024, 512, 256, 128, 64, 32, 16, 8):
            tm = min(cand, tm_cap)
            if _pipeline_bytes(tm, tn, H, in_dsize, out_dsize) <= budget:
                return tm, tn
    # TODO(synk): for H so large that even (8,128) tiles blow VMEM, add a K
    # grid axis over H with an f32 accumulator scratch (pl.when init/finalize).
    return min(8, tm_cap), min(128, tn_cap)


def similarity(x, y, temp, *, mxu_bf16=False, tm=None, tn=None):
    """Cosine similarity along the last dim divided by `temp`.

    Expects x: [B, 1, H], y: [1, B2, H]; returns [B, B2] in the input dtype
    (same semantics as broadcasting nn.CosineSimilarity(dim=-1) / temp).
    """
    assert x.ndim == 3 and y.ndim == 3
    B, one_x, H = x.shape
    one_y, B2, H2 = y.shape
    assert one_x == 1 and one_y == 1 and H == H2

    xm = x.reshape(B, H)
    ym = y.reshape(B2, H)

    out_dtype = jnp.result_type(xm.dtype, ym.dtype)
    in_dsize = max(jnp.dtype(xm.dtype).itemsize, jnp.dtype(ym.dtype).itemsize)
    out_dsize = jnp.dtype(out_dtype).itemsize

    vmem_limit = _vmem_limit_bytes()
    budget = (vmem_limit * 4) // 5
    auto_tm, auto_tn = _select_tiles(B, B2, H, in_dsize, out_dsize, budget)
    tm = auto_tm if tm is None else min(tm, _round_up(B, 8))
    tn = auto_tn if tn is None else min(tn, _round_up(B2, 128))

    # Precompute inverse norms once (f32), folding 1/temp into the X scale.
    # Note: torch clamps the product of norms by eps; clamping each norm
    # separately is equivalent except for degenerate near-zero-norm inputs.
    inv_temp = 1.0 / float(temp)
    xf = xm.astype(jnp.float32)
    yf = ym.astype(jnp.float32)
    inv_nx = lax.rsqrt(
        jnp.maximum(jnp.sum(xf * xf, axis=-1, keepdims=True), _EPS * _EPS)
    ) * inv_temp                                                   # [B, 1]
    inv_ny = lax.rsqrt(
        jnp.maximum(jnp.sum(yf * yf, axis=-1, keepdims=True), _EPS * _EPS)
    ).reshape(1, B2)                                               # [1, B2]

    grid = (pl.cdiv(B, tm), pl.cdiv(B2, tn))

    # Advisory cost hint for XLA's scheduler: X read once, Y re-read once per
    # X row-tile, plus the output write.
    cost = pl.CostEstimate(
        flops=2 * B * B2 * H,
        transcendentals=0,
        bytes_accessed=(B * H * in_dsize
                        + grid[0] * B2 * H * in_dsize
                        + B * B2 * out_dsize),
    )

    kernel = functools.partial(_similarity_kernel, mxu_bf16=mxu_bf16)

    return pl.pallas_call(
        kernel,
        out_shape=jax.ShapeDtypeStruct((B, B2), out_dtype),
        grid=grid,
        in_specs=[
            pl.BlockSpec((tm, H), lambda i, j: (i, 0)),   # X row tile (resident over j)
            pl.BlockSpec((tn, H), lambda i, j: (j, 0)),   # Y row tile (streams)
            pl.BlockSpec((tm, 1), lambda i, j: (i, 0)),   # inv_nx * 1/temp
            pl.BlockSpec((1, tn), lambda i, j: (0, j)),   # inv_ny
        ],
        out_specs=pl.BlockSpec((tm, tn), lambda i, j: (i, j)),
        compiler_params=pltpu.CompilerParams(
            dimension_semantics=("parallel", "parallel"),
            vmem_limit_bytes=vmem_limit,
        ),
        cost_estimate=cost,
    )(xm, ym, inv_nx, inv_ny)


def _reference(x, y, temp):
    # Pure-JAX reference matching torch.nn.CosineSimilarity(dim=-1) / temp.
    xb, yb = jnp.broadcast_arrays(x.astype(jnp.float32), y.astype(jnp.float32))
    nx = jnp.maximum(jnp.linalg.norm(xb, axis=-1), _EPS)
    ny = jnp.maximum(jnp.linalg.norm(yb, axis=-1), _EPS)
    return jnp.sum(xb * yb, axis=-1) / (nx * ny) / temp


if __name__ == "__main__":
    temp = 0.05

    # Small primary test (single tile; ragged lane dim handled by masked stores).
    kx, ky = jax.random.split(jax.random.PRNGKey(0))
    B, H = 8, 32
    x = jax.random.normal(kx, (B, 1, H), dtype=jnp.float32)
    y = jax.random.normal(ky, (1, B, H), dtype=jnp.float32)

    out = jax.block_until_ready(similarity(x, y, temp))
    ref = _reference(x, y, temp)
    assert out.shape == (B, B)
    assert out.dtype == x.dtype
    assert jnp.allclose(out, ref, atol=1e-4, rtol=1e-4), "mismatch vs reference (small)"

    # Larger test that exercises the multi-tile grid + ragged edge blocks.
    kx2, ky2 = jax.random.split(jax.random.PRNGKey(1))
    B2, H2 = 384, 64
    x2 = jax.random.normal(kx2, (B2, 1, H2), dtype=jnp.float32)
    y2 = jax.random.normal(ky2, (1, B2, H2), dtype=jnp.float32)

    out2 = jax.block_until_ready(similarity(x2, y2, temp))
    ref2 = _reference(x2, y2, temp)
    assert out2.shape == (B2, B2)
    assert jnp.allclose(out2, ref2, atol=1e-4, rtol=1e-4), "mismatch vs reference (tiled)"

    # Exercise the opt-in bf16-MXU path (lower precision; shape/run check only).
    out3 = jax.block_until_ready(similarity(x, y, temp, mxu_bf16=True))
    assert out3.shape == (B, B)

    print("KERNEL_OK")
</pallas_src>

<mosaic_0001>
module attributes {stable_mosaic.version = 11 : i64} {
  func.func @_similarity_kernel(%arg0: i32, %arg1: i32, %arg2: memref<8x32xf32, #tpu.memory_space<vmem>>, %arg3: memref<128x32xf32, #tpu.memory_space<vmem>>, %arg4: memref<8x1xf32, #tpu.memory_space<vmem>>, %arg5: memref<1x128xf32, #tpu.memory_space<vmem>>, %arg6: memref<8x128xf32, #tpu.memory_space<vmem>>) attributes {dimension_semantics = [#tpu.dimension_semantics<parallel>, #tpu.dimension_semantics<parallel>], iteration_bounds = array<i64: 1, 1>, scalar_prefetch = 0 : i64, scratch_operands = 0 : i64, tpu.core_type = #tpu.core_type<tc>, window_params = [{transform_indices = @transform_0, window_bounds = array<i64: 8, 32>}, {transform_indices = @transform_1, window_bounds = array<i64: 128, 32>}, {transform_indices = @transform_2, window_bounds = array<i64: 8, 1>}, {transform_indices = @transform_3, window_bounds = array<i64: 1, 128>}, {transform_indices = @transform_4, window_bounds = array<i64: 8, 128>}]} {
    %c0 = arith.constant 0 : index
    %c0_0 = arith.constant 0 : index
    %0 = vector.load %arg2[%c0, %c0_0] : memref<8x32xf32, #tpu.memory_space<vmem>>, vector<8x32xf32>
    %c0_1 = arith.constant 0 : index
    %c0_2 = arith.constant 0 : index
    %1 = vector.load %arg3[%c0_1, %c0_2] : memref<128x32xf32, #tpu.memory_space<vmem>>, vector<128x32xf32>
    %cst = arith.constant dense<0.000000e+00> : vector<8x128xf32>
    %2 = tpu.matmul %0, %1, %cst {dimension_numbers = #tpu.dot_dimension_numbers<[1], [1], [0], [0], [0, 0, 1, 0], [], []>} : vector<8x32xf32>, vector<128x32xf32>, vector<8x128xf32> -> vector<8x128xf32>
    %c0_3 = arith.constant 0 : index
    %c0_4 = arith.constant 0 : index
    %3 = vector.load %arg4[%c0_3, %c0_4] : memref<8x1xf32, #tpu.memory_space<vmem>>, vector<8x1xf32>
    %4 = vector.broadcast %3 : vector<8x1xf32> to vector<8x128xf32>
    %5 = arith.mulf %2, %4 : vector<8x128xf32>
    %c0_5 = arith.constant 0 : index
    %c0_6 = arith.constant 0 : index
    %6 = vector.load %arg5[%c0_5, %c0_6] : memref<1x128xf32, #tpu.memory_space<vmem>>, vector<1x128xf32>
    %7 = vector.broadcast %6 : vector<1x128xf32> to vector<8x128xf32>
    %8 = arith.mulf %5, %7 : vector<8x128xf32>
    %c0_7 = arith.constant 0 : index
    %c0_8 = arith.constant 0 : index
    %9 = vector.load %arg6[%c0_7, %c0_8] : memref<8x128xf32, #tpu.memory_space<vmem>>, vector<8x128xf32>
    tpu.vector_store %arg6[%c0_7, %c0_8], %8 {strides = array<i32>} : memref<8x128xf32, #tpu.memory_space<vmem>>, vector<8x128xf32>,
    return
  }
  func.func @transform_0(%arg0: i32, %arg1: i32) -> (i32, i32) {
    %c0_i32 = arith.constant 0 : i32
    %c0_i32_0 = arith.constant 0 : i32
    return %arg0, %c0_i32 : i32, i32
  }
  func.func @transform_1(%arg0: i32, %arg1: i32) -> (i32, i32) {
    %c0_i32 = arith.constant 0 : i32
    %c0_i32_0 = arith.constant 0 : i32
    return %arg1, %c0_i32 : i32, i32
  }
  func.func @transform_2(%arg0: i32, %arg1: i32) -> (i32, i32) {
    %c0_i32 = arith.constant 0 : i32
    %c0_i32_0 = arith.constant 0 : i32
    return %arg0, %c0_i32 : i32, i32
  }
  func.func @transform_3(%arg0: i32, %arg1: i32) -> (i32, i32) {
    %c0_i32 = arith.constant 0 : i32
    %c0_i32_0 = arith.constant 0 : i32
    return %c0_i32, %arg1 : i32, i32
  }
  func.func @transform_4(%arg0: i32, %arg1: i32) -> (i32, i32) {
    %c0_i32 = arith.constant 0 : i32
    return %arg0, %arg1 : i32, i32
  }
}

</mosaic_0001>

<bundles_post_ra>
// kernel: tpu_custom_call.1
= control target key start
LH: loop header
LB: loop body
LE: loop exit
PB: predicated region body
PF: predicated region fallthrough
CT: control target
= control target key end

     0   :  { %9 = vsyncpa [#allocation3], 0  ;;  %s450_s0 = inlined_call_operand.vmem [shape: f32[8,32], index: 0, kind: input, shape index: {}]   ;;  %s451_s1 = inlined_call_operand.hbm [shape: f32[8,32], index: 1, kind: input, shape index: {}]   ;;  %s452_s2 = inlined_call_operand.vmem [shape: f32[8,1], index: 2, kind: input, shape index: {}]   ;;  %s453_s3 = inlined_call_operand.vmem [shape: f32[1,8], index: 3, kind: input, shape index: {}]   ;;  %s454_s4 = inlined_call_operand.hbm [shape: f32[8,8], index: 4, kind: output, shape index: {}]  }
   0x1   :  { %10 = vsyncpa [#allocation4], 0 }
   0x2   :  { %17 = vsyncadd [#allocation3], 1920  ;;  %s361_s15 = smov [#allocation2]   ;;  %s313_s19 = scalar_lea.hbm %s451_s1, 128 }
   0x3   :  { %s18_s16 = sshll.u32 %s361_s15, 4  ;;  %p314_p0 = scmp.ne.s32.totalorder %s451_s1, %s313_s19  ;;  %s19_s16 = int_to_ptr.vmem [resolvable:$true] %s18_s16 }
   0x4   :  { %p317_p1 = scmp.lt.u32.totalorder %s313_s19, %s451_s1 }
   0x6   :  { %p319_p2 = pnand %p317_p1, %p314_p0 }
   0x8   :  { %322 = shalt.err (!%p319_p2)
}
   0x9   :  { %s323_s24 = scalar_lea.vmem %s19_s16, 128  ;;  %s327_s25 = scalar_lea.vmem %s19_s16, 2048 }
   0xa   :  { %p324_p3 = scmp.ne.s32.totalorder %s19_s16, %s323_s24  ;;  %p328_p4 = scmp.lt.s32.totalorder %s19_s16, %s19_s16 }
   0xb   :  { %p329_p5 = scmp.lt.s32.totalorder %s327_s25, %s323_s24 }
   0xd   :  { %p330_p6 = por %p329_p5, %p328_p4 }
   0xf   :  { %p331_p7 = pnand %p330_p6, %p324_p3 }
  0x11   :  { %334 = shalt.err (!%p331_p7)
}
  0x12   :  { %s362_s26 = smov 128   ;;  %s363_s27 = smov 8  }
  0x13   :  { %24 = dma.hbm_to_vmem [thread:$0]  %s451_s1, 128, %s19_s16, [#allocation3], %s362_s26, %s362_s26, %s363_s27  }
  0x14   :  { %357 = dma.done.wait [#allocation3], 2048  }
  0x15   :  { %358 = vsyncadd [#allocation3], 4294965248  ;;  %v364_v0 = vmov 0.0|0.0   ;;  %vm365_vm0 = vmmov 0   ;;  %v366_v1 = vmov 0.0   ;;  %v367_v2 = vmov 0  }
  0x16   :  { %272 = vmatprep.subr.bf16.mxu0 %v364_v0  ;;  %269 = vmatprep.mubr.msk.f32.mxu0 %vm365_vm0, %v366_v1  ;;  %vm49_vm1 = vcmask 261120   ;;  %v33_v3 = vld [vmem:[#allocation2] sm:$0xff]  ;;  %v34_v4 = vld [vmem:[#allocation2 + $0x8] sm:$0xff]  ;;  %v35_v7 = vld [vmem:[#allocation2 + $0x10] sm:$0xff]  ;;  %s368_s8 = smov [#allocation5]  }
  0x17   :  { %312 = vset.pattern.permute.xlu0 %v367_v2  ;;  %vm408_vm2 = vmpackc.low %vm49_vm1, %vm49_vm1  ;;  %v273_v6 = vpack.c.bf16 %v34_v4, %v33_v3  ;;  %v36_v8 = vld [vmem:[#allocation2 + $0x18] sm:$0xff]  ;;  %v171_v9 = vld [vmem:[%s452_s2] sm:$0xff]  ;;  %s193_s9 = sshll.u32 %s368_s8, 4  ;;  %s194_s9 = int_to_ptr.vmem [resolvable:$true] %s193_s9 }
  0x18   :  { %174 = vperm.xlu0 %312, %v171_v9   ;;  %v277_v10 = vpack.c.bf16 %v36_v8, %v35_v7  ;;  %v37_v11 = vld [vmem:[#allocation2 + $0x20] sm:$0xff]  ;;  %v38_v12 = vld [vmem:[#allocation2 + $0x28] sm:$0xff]  ;;  %v39_v14 = vld [vmem:[#allocation2 + $0x30] sm:$0xff]  ;;  %s335_s10 = scalar_lea.vmem %s194_s9, 128  ;;  %p340_p9 = scmp.lt.s32.totalorder %s194_s9, %s194_s9 }
  0x19   :  { %275 = vmatpush3.bf16.xpose.msk.msra.mxu0 %vm408_vm2, %v273_v6  ;;  %v281_v13 = vpack.c.bf16 %v38_v12, %v37_v11  ;;  %v40_v15 = vld [vmem:[#allocation2 + $0x38] sm:$0xff]  ;;  %v41_v17 = vld [vmem:[#allocation2 + $0x40] sm:$0xff]  ;;  %v42_v18 = vld [vmem:[#allocation2 + $0x48] sm:$0xff]  ;;  %p336_p8 = scmp.ne.s32.totalorder %s194_s9, %s335_s10  ;;  %p341_p10 = scmp.lt.s32.totalorder %s335_s10, %s335_s10 }
  0x1a   :  { %276 = vmatprep.subr.bf16.mxu0 %v364_v0  ;;  %v285_v16 = vpack.c.bf16 %v40_v15, %v39_v14  ;;  %v289_v19 = vpack.c.bf16 %v42_v18, %v41_v17  ;;  %v43_v20 = vld [vmem:[#allocation2 + $0x50] sm:$0xff]  ;;  %v44_v21 = vld [vmem:[#allocation2 + $0x58] sm:$0xff]  ;;  %v45_v23 = vld [vmem:[#allocation2 + $0x60] sm:$0xff] }
  0x1b   :  { %v293_v22 = vpack.c.bf16 %v44_v21, %v43_v20  ;;  %v46_v24 = vld [vmem:[#allocation2 + $0x68] sm:$0xff]  ;;  %v47_v26 = vld [vmem:[#allocation2 + $0x70] sm:$0xff]  ;;  %v48_v27 = vld [vmem:[#allocation2 + $0x78] sm:$0xff]  ;;  %p342_p11 = por %p341_p10, %p340_p9 }
  0x1c   :  { %v297_v25 = vpack.c.bf16 %v46_v24, %v45_v23  ;;  %v301_v28 = vpack.c.bf16 %v48_v27, %v47_v26  ;;  %v32_v29 = vld [vmem:[%s450_s0] sm:$0xff] }
  0x1d   :  { %v219_v32 = vld [vmem:[%s453_s3] ss:$0 sm:$0xff]  ;;  %p343_p12 = pnand %p342_p11, %p336_p8 }
  0x21   :  { %279 = vmatpush3.bf16.xpose.msk.msra.mxu0 %vm408_vm2, %v277_v10 }
  0x22   :  { %280 = vmatprep.subr.bf16.mxu0 %v364_v0 }
  0x29   :  { %283 = vmatpush3.bf16.xpose.msk.msra.mxu0 %vm408_vm2, %v281_v13 }
  0x2a   :  { %284 = vmatprep.subr.bf16.mxu0 %v364_v0 }
  0x31   :  { %287 = vmatpush3.bf16.xpose.msk.msra.mxu0 %vm408_vm2, %v285_v16 }
  0x32   :  { %288 = vmatprep.subr.bf16.mxu0 %v364_v0 }
  0x39   :  { %291 = vmatpush3.bf16.xpose.msk.msra.mxu0 %vm408_vm2, %v289_v19 }
  0x3a   :  { %292 = vmatprep.subr.bf16.mxu0 %v364_v0 }
  0x41   :  { %295 = vmatpush3.bf16.xpose.msk.msra.mxu0 %vm408_vm2, %v293_v22 }
  0x42   :  { %296 = vmatprep.subr.bf16.mxu0 %v364_v0 }
  0x49   :  { %299 = vmatpush3.bf16.xpose.msk.msra.mxu0 %vm408_vm2, %v297_v25 }
  0x4a   :  { %300 = vmatprep.subr.bf16.mxu0 %v364_v0 }
  0x51   :  { %303 = vmatpush3.bf16.xpose.msk.msra.mxu0 %vm408_vm2, %v301_v28 }
  0x58   :  { %270 = vmatmul.mubr.msk.f32.vlgmr.msra.gmra.mrb[0].mxu0 %vm49_vm1, %v32_v29 }
  0x97   :  { %v175_v30 = vpop.permute.xlu0 %174 }
 0x12b   :  { %v167_v31 = vpop.f32.mrb[0].mxu0 }
 0x12c   :  { %v177_v33 = vmul.f32 %v175_v30, %v167_v31  ;;  %v271_v34 = vpop.f32.mrb[1].mxu0 }
 0x12e   :  { %v185_v35 = vmul.f32 %v219_v32, %v177_v33 }
 0x130   :  { %186 = vst [vmem:[#allocation5] sm:$0xff] %v185_v35 }
 0x131   :  { %346 = shalt.err (!%p343_p12)
}
 0x132   :  { %s347_s12 = scalar_lea.hbm %s454_s4, 128 }
 0x133   :  { %p348_p13 = scmp.ne.s32.totalorder %s454_s4, %s347_s12  ;;  %p351_p0 = scmp.lt.u32.totalorder %s347_s12, %s454_s4 }
 0x135   :  { %p353_p1 = pnand %p351_p0, %p348_p13 }
 0x137   :  { %356 = shalt.err (!%p353_p1)
}
 0x138   :  { %196 = dma.vmem_to_hbm [thread:$0]  %s194_s9, 128, %s454_s4, [#allocation4]  }
 0x139   :  { %359 = dma.done.wait [#allocation4], 128  }
 0x13a   :  { %360 = vsyncadd [#allocation4], 4294967168 }
 0x13b   :  { %200 = vsyncpa [#allocation3], 1 }
 0x13c   :  { %201 = vsyncpa [#allocation4], 1 }

</bundles_post_ra>
